<compile_context>
chip_gen: v7x
topology: tpu7x:2x2x1
jax: 0.10.0
libtpu: 0.0.40
codegen_flags: <defaults>
</compile_context>

<pallas_src>
import functools
import math

import jax
import jax.numpy as jnp
from jax import lax
from jax.experimental import pallas as pl
from jax.experimental.pallas import tpu as pltpu


def _mha_flash_kernel(q_ref, k_ref, v_ref,
                      wq_ref, bq_ref, wk_ref, bk_ref, wv_ref, bv_ref,
                      wo_ref, bo_ref,
                      o_ref,
                      q_sc, m_sc, l_sc, acc_sc, out_acc,
                      *, scale):
    h = pl.program_id(2)
    kv = pl.program_id(3)
    nh = pl.num_programs(2)
    nkv = pl.num_programs(3)

    # ---- per-(batch, q-tile, head) init: project the query tile once and
    #      reset the online-softmax state.
    @pl.when(kv == 0)
    def _init():
        xq = q_ref[0]                                              # (tq, D) bf16
        qh = jnp.dot(xq, wq_ref[0], preferred_element_type=jnp.float32)
        qh = (qh + bq_ref[0]) * scale                              # fold 1/sqrt(d_k)
        q_sc[...] = qh.astype(q_sc.dtype)                          # bf16 scratch
        m_sc[...] = jnp.full(m_sc.shape, -jnp.inf, dtype=m_sc.dtype)
        l_sc[...] = jnp.zeros(l_sc.shape, dtype=l_sc.dtype)
        acc_sc[...] = jnp.zeros(acc_sc.shape, dtype=acc_sc.dtype)

    # ---- project this K/V tile for the current head (bf16 in, f32 acc).
    xk = k_ref[0]                                                  # (tkv, D) bf16
    xv = v_ref[0]
    kh = jnp.dot(xk, wk_ref[0], preferred_element_type=jnp.float32) + bk_ref[0]
    vh = jnp.dot(xv, wv_ref[0], preferred_element_type=jnp.float32) + bv_ref[0]
    kh = kh.astype(jnp.bfloat16)                                   # (tkv, d_k)
    vh = vh.astype(jnp.bfloat16)

    # ---- scores: contract last dims of q and k (no explicit transpose).
    s = lax.dot_general(q_sc[...], kh, (((1,), (1,)), ((), ())),
                        preferred_element_type=jnp.float32)        # (tq, tkv)

    # ---- online softmax update.
    m_prev = m_sc[...]
    m_new = jnp.maximum(m_prev, jnp.max(s, axis=-1, keepdims=True))
    alpha = jnp.exp(m_prev - m_new)
    p = jnp.exp(s - m_new)
    l_sc[...] = alpha * l_sc[...] + jnp.sum(p, axis=-1, keepdims=True)
    acc_sc[...] = alpha * acc_sc[...] + jnp.dot(
        p.astype(jnp.bfloat16), vh, preferred_element_type=jnp.float32)
    m_sc[...] = m_new

    # ---- finalize this head: normalize, project, accumulate over heads.
    @pl.when(kv == nkv - 1)
    def _finalize():
        ctx = acc_sc[...] * pl.reciprocal(l_sc[...], approx=True)  # (tq, d_k) f32
        out_h = jnp.dot(ctx.astype(jnp.bfloat16), wo_ref[0],
                        preferred_element_type=jnp.float32)        # (tq, D) f32

        @pl.when(h == 0)
        def _():
            out_acc[...] = out_h + bo_ref[...]

        @pl.when(h > 0)
        def _():
            out_acc[...] = out_acc[...] + out_h

        @pl.when(h == nh - 1)
        def _():
            o_ref[0] = out_acc[...].astype(o_ref.dtype)


def _pick_tile(s, cap):
    """Largest tile <= cap that divides s (multiple of 8), else full s."""
    if s <= cap:
        return s
    t = cap
    while t >= 8:
        if s % t == 0:
            return t
        t -= 8
    return s


def multihead_attention(query, key, value, params, num_heads, *, tq=None, tkv=None):
    """query/key/value: (B, S, D).  params: nn.Linear-layout w_q..b_o."""
    B, S, D = query.shape
    assert D % num_heads == 0, "d_model must be divisible by num_heads"
    d_k = D // num_heads
    out_dtype = query.dtype

    tq = tq or _pick_tile(S, 256)
    tkv = tkv or _pick_tile(S, 512)
    assert S % tq == 0 and S % tkv == 0
    nq, nkv = S // tq, S // tkv

    cdt = jnp.bfloat16  # MXU compute dtype (f32 accumulation inside the kernel)

    # Pre-transpose nn.Linear weights (out, in) -> (in, out) and split per head
    # on the host so the kernel sees straight MXU feeds.
    def per_head_in(w):  # (D, D) -> (H, D, d_k), head h = W.T[:, h*d_k:(h+1)*d_k]
        return (jnp.transpose(w, (1, 0))
                .reshape(D, num_heads, d_k)
                .transpose(1, 0, 2)
                .astype(cdt))

    wq_h = per_head_in(params["w_q"])
    wk_h = per_head_in(params["w_k"])
    wv_h = per_head_in(params["w_v"])
    # Output projection split along its input (head) dim: (H, d_k, D).
    wo_h = jnp.transpose(params["w_o"], (1, 0)).reshape(num_heads, d_k, D).astype(cdt)

    bq_h = params["b_q"].reshape(num_heads, 1, d_k).astype(jnp.float32)
    bk_h = params["b_k"].reshape(num_heads, 1, d_k).astype(jnp.float32)
    bv_h = params["b_v"].reshape(num_heads, 1, d_k).astype(jnp.float32)
    bo = params["b_o"].reshape(1, D).astype(jnp.float32)

    qx = query.astype(cdt)
    kx = key.astype(cdt)
    vx = value.astype(cdt)

    q_spec = pl.BlockSpec((1, tq, D), lambda b, qi, h, kv: (b, qi, 0))
    kv_spec = pl.BlockSpec((1, tkv, D), lambda b, qi, h, kv: (b, kv, 0))
    w_in_spec = pl.BlockSpec((1, D, d_k), lambda b, qi, h, kv: (h, 0, 0))
    b_in_spec = pl.BlockSpec((1, 1, d_k), lambda b, qi, h, kv: (h, 0, 0))
    wo_spec = pl.BlockSpec((1, d_k, D), lambda b, qi, h, kv: (h, 0, 0))
    bo_spec = pl.BlockSpec((1, D), lambda b, qi, h, kv: (0, 0))
    out_spec = pl.BlockSpec((1, tq, D), lambda b, qi, h, kv: (b, qi, 0))

    kernel = functools.partial(_mha_flash_kernel, scale=1.0 / math.sqrt(d_k))

    flops = 8 * B * S * D * D + 4 * B * S * S * D
    transcendentals = B * num_heads * S * S
    bytes_accessed = 3 * B * S * D * 2 + B * S * D * 4 + 4 * D * D * 2

    return pl.pallas_call(
        kernel,
        out_shape=jax.ShapeDtypeStruct((B, S, D), out_dtype),
        grid_spec=pltpu.PrefetchScalarGridSpec(
            num_scalar_prefetch=0,
            grid=(B, nq, num_heads, nkv),
            in_specs=[q_spec, kv_spec, kv_spec,
                      w_in_spec, b_in_spec,   # w_q, b_q
                      w_in_spec, b_in_spec,   # w_k, b_k
                      w_in_spec, b_in_spec,   # w_v, b_v
                      wo_spec, bo_spec],      # w_o, b_o
            out_specs=out_spec,
            scratch_shapes=[
                pltpu.VMEM((tq, d_k), cdt),          # q_sc (scaled, biased q tile)
                pltpu.VMEM((tq, 1), jnp.float32),    # m (running max)
                pltpu.VMEM((tq, 1), jnp.float32),    # l (running denom)
                pltpu.VMEM((tq, d_k), jnp.float32),  # acc (unnormalized ctx)
                pltpu.VMEM((tq, D), jnp.float32),    # out_acc (output proj accum)
            ],
        ),
        compiler_params=pltpu.CompilerParams(
            dimension_semantics=("parallel", "parallel", "arbitrary", "arbitrary"),
            vmem_limit_bytes=32 * 1024 * 1024),
        cost_estimate=pl.CostEstimate(
            flops=flops,
            transcendentals=transcendentals,
            bytes_accessed=bytes_accessed),
    )(qx, kx, vx,
      wq_h, bq_h, wk_h, bk_h, wv_h, bv_h, wo_h, bo)


def _reference(query, key, value, params, num_heads):
    """Pure-JAX f32 reference mirroring the PyTorch forward (mask=None, no dropout)."""
    B, S, D = query.shape
    d_k = D // num_heads

    def lin(x, w, b):
        return x @ w.T + b

    q = lin(query, params["w_q"], params["b_q"])
    k = lin(key, params["w_k"], params["b_k"])
    v = lin(value, params["w_v"], params["b_v"])

    def split(t):
        return t.reshape(B, S, num_heads, d_k).transpose(0, 2, 1, 3)

    qh, kh, vh = split(q), split(k), split(v)
    scores = jnp.einsum("bhqd,bhkd->bhqk", qh, kh) / math.sqrt(d_k)
    attn = jax.nn.softmax(scores, axis=-1)
    ctx = jnp.einsum("bhqk,bhkd->bhqd", attn, vh)
    ctx = ctx.transpose(0, 2, 1, 3).reshape(B, S, D)
    return lin(ctx, params["w_o"], params["b_o"])


if __name__ == "__main__":
    D, H = 32, 4  # d_model, num_heads

    key0 = jax.random.PRNGKey(0)
    keys = jax.random.split(key0, 16)

    bound = 1.0 / math.sqrt(D)
    params = {
        "w_q": jax.random.uniform(keys[0], (D, D), jnp.float32, -bound, bound),
        "b_q": jax.random.uniform(keys[1], (D,), jnp.float32, -bound, bound),
        "w_k": jax.random.uniform(keys[2], (D, D), jnp.float32, -bound, bound),
        "b_k": jax.random.uniform(keys[3], (D,), jnp.float32, -bound, bound),
        "w_v": jax.random.uniform(keys[4], (D, D), jnp.float32, -bound, bound),
        "b_v": jax.random.uniform(keys[5], (D,), jnp.float32, -bound, bound),
        "w_o": jax.random.uniform(keys[6], (D, D), jnp.float32, -bound, bound),
        "b_o": jax.random.uniform(keys[7], (D,), jnp.float32, -bound, bound),
    }

    # bf16 MXU compute -> compare against the f32 reference with a looser tol.
    TOL = 3e-2

    # Test 1: single q/kv tile (B=2, S=8).
    B, S = 2, 8
    q1 = jax.random.normal(keys[8], (B, S, D), jnp.float32)
    k1 = jax.random.normal(keys[9], (B, S, D), jnp.float32)
    v1 = jax.random.normal(keys[10], (B, S, D), jnp.float32)
    out1 = jax.block_until_ready(multihead_attention(q1, k1, v1, params, H))
    ref1 = _reference(q1, k1, v1, params, H)
    assert out1.shape == (B, S, D)
    assert jnp.allclose(out1, ref1, atol=TOL, rtol=TOL), "mismatch vs reference (test 1)"

    # Test 2: exercises the multi-tile online-softmax / output-accumulation path
    # (B=2, S=16, tq=tkv=8 -> grid (2, 2, 4, 2)).
    B, S = 2, 16
    q2 = jax.random.normal(keys[11], (B, S, D), jnp.float32)
    k2 = jax.random.normal(keys[12], (B, S, D), jnp.float32)
    v2 = jax.random.normal(keys[13], (B, S, D), jnp.float32)
    out2 = jax.block_until_ready(
        multihead_attention(q2, k2, v2, params, H, tq=8, tkv=8))
    ref2 = _reference(q2, k2, v2, params, H)
    assert out2.shape == (B, S, D)
    assert jnp.allclose(out2, ref2, atol=TOL, rtol=TOL), "mismatch vs reference (test 2)"

    print("KERNEL_OK")
</pallas_src>

<mosaic_0001>
module attributes {stable_mosaic.version = 11 : i64} {
  func.func @_mha_flash_kernel(%arg0: i32, %arg1: i32, %arg2: i32, %arg3: i32, %arg4: memref<1x8x32xbf16, #tpu.memory_space<vmem>>, %arg5: memref<1x8x32xbf16, #tpu.memory_space<vmem>>, %arg6: memref<1x8x32xbf16, #tpu.memory_space<vmem>>, %arg7: memref<1x32x8xbf16, #tpu.memory_space<vmem>>, %arg8: memref<1x1x8xf32, #tpu.memory_space<vmem>>, %arg9: memref<1x32x8xbf16, #tpu.memory_space<vmem>>, %arg10: memref<1x1x8xf32, #tpu.memory_space<vmem>>, %arg11: memref<1x32x8xbf16, #tpu.memory_space<vmem>>, %arg12: memref<1x1x8xf32, #tpu.memory_space<vmem>>, %arg13: memref<1x8x32xbf16, #tpu.memory_space<vmem>>, %arg14: memref<1x32xf32, #tpu.memory_space<vmem>>, %arg15: memref<1x8x32xf32, #tpu.memory_space<vmem>>, %arg16: memref<8x8xbf16, #tpu.memory_space<vmem>>, %arg17: memref<8x1xf32, #tpu.memory_space<vmem>>, %arg18: memref<8x1xf32, #tpu.memory_space<vmem>>, %arg19: memref<8x8xf32, #tpu.memory_space<vmem>>, %arg20: memref<8x32xf32, #tpu.memory_space<vmem>>) attributes {dimension_semantics = [#tpu.dimension_semantics<parallel>, #tpu.dimension_semantics<parallel>, #tpu.dimension_semantics<arbitrary>, #tpu.dimension_semantics<arbitrary>], iteration_bounds = array<i64: 2, 1, 4, 1>, scalar_prefetch = 0 : i64, scratch_operands = 5 : i64, tpu.core_type = #tpu.core_type<tc>, window_params = [{transform_indices = @transform_0, window_bounds = array<i64: 1, 8, 32>}, {transform_indices = @transform_1, window_bounds = array<i64: 1, 8, 32>}, {transform_indices = @transform_2, window_bounds = array<i64: 1, 8, 32>}, {transform_indices = @transform_3, window_bounds = array<i64: 1, 32, 8>}, {transform_indices = @transform_4, window_bounds = array<i64: 1, 1, 8>}, {transform_indices = @transform_5, window_bounds = array<i64: 1, 32, 8>}, {transform_indices = @transform_6, window_bounds = array<i64: 1, 1, 8>}, {transform_indices = @transform_7, window_bounds = array<i64: 1, 32, 8>}, {transform_indices = @transform_8, window_bounds = array<i64: 1, 1, 8>}, {transform_indices = @transform_9, window_bounds = array<i64: 1, 8, 32>}, {pipeline_mode = #tpu.pipeline_mode<synchronous>, transform_indices = @transform_10, window_bounds = array<i64: 1, 32>}, {transform_indices = @transform_11, window_bounds = array<i64: 1, 8, 32>}]} {
    %c0_i32 = arith.constant 0 : i32
    %0 = arith.cmpi eq, %arg3, %c0_i32 : i32
    %1 = arith.extui %0 : i1 to i32
    %c0_i32_0 = arith.constant 0 : i32
    %2 = arith.cmpi ne, %1, %c0_i32_0 : i32
    scf.if %2 {
      %c0_39 = arith.constant 0 : index
      %c0_40 = arith.constant 0 : index
      %c0_41 = arith.constant 0 : index
      %51 = vector.load %arg4[%c0_39, %c0_40, %c0_41] : memref<1x8x32xbf16, #tpu.memory_space<vmem>>, vector<1x8x32xbf16>
      %52 = vector.shape_cast %51 : vector<1x8x32xbf16> to vector<8x32xbf16>
      %c0_42 = arith.constant 0 : index
      %c0_43 = arith.constant 0 : index
      %c0_44 = arith.constant 0 : index
      %53 = vector.load %arg7[%c0_42, %c0_43, %c0_44] : memref<1x32x8xbf16, #tpu.memory_space<vmem>>, vector<1x32x8xbf16>
      %54 = vector.shape_cast %53 : vector<1x32x8xbf16> to vector<32x8xbf16>
      %cst_45 = arith.constant dense<0.000000e+00> : vector<8x8xf32>
      %55 = tpu.matmul %52, %54, %cst_45 {dimension_numbers = #tpu.dot_dimension_numbers<[1], [0], [0], [1], [0, 0, 1, 1], [], []>} : vector<8x32xbf16>, vector<32x8xbf16>, vector<8x8xf32> -> vector<8x8xf32>
      %c0_46 = arith.constant 0 : index
      %c0_47 = arith.constant 0 : index
      %c0_48 = arith.constant 0 : index
      %56 = vector.load %arg8[%c0_46, %c0_47, %c0_48] : memref<1x1x8xf32, #tpu.memory_space<vmem>>, vector<1x1x8xf32>
      %57 = vector.shape_cast %56 : vector<1x1x8xf32> to vector<1x8xf32>
      %58 = vector.broadcast %57 : vector<1x8xf32> to vector<8x8xf32>
      %59 = arith.addf %55, %58 : vector<8x8xf32>
      %cst_49 = arith.constant 0.353553385 : f32
      %60 = vector.broadcast %cst_49 : f32 to vector<8x8xf32>
      %61 = arith.mulf %59, %60 : vector<8x8xf32>
      %62 = arith.truncf %61 : vector<8x8xf32> to vector<8x8xbf16>
      %c0_50 = arith.constant 0 : index
      %c0_51 = arith.constant 0 : index
      %63 = vector.load %arg16[%c0_50, %c0_51] : memref<8x8xbf16, #tpu.memory_space<vmem>>, vector<8x8xbf16>
      tpu.vector_store %arg16[%c0_50, %c0_51], %62 {strides = array<i32>} : memref<8x8xbf16, #tpu.memory_space<vmem>>, vector<8x8xbf16>,
      %cst_52 = arith.constant 0xFF800000 : f32
      %64 = vector.broadcast %cst_52 : f32 to vector<8x1xf32>
      %c0_53 = arith.constant 0 : index
      %c0_54 = arith.constant 0 : index
      %65 = vector.load %arg17[%c0_53, %c0_54] : memref<8x1xf32, #tpu.memory_space<vmem>>, vector<8x1xf32>
      tpu.vector_store %arg17[%c0_53, %c0_54], %64 {strides = array<i32>} : memref<8x1xf32, #tpu.memory_space<vmem>>, vector<8x1xf32>,
      %cst_55 = arith.constant 0.000000e+00 : f32
      %66 = vector.broadcast %cst_55 : f32 to vector<8x1xf32>
      %c0_56 = arith.constant 0 : index
      %c0_57 = arith.constant 0 : index
      %67 = vector.load %arg18[%c0_56, %c0_57] : memref<8x1xf32, #tpu.memory_space<vmem>>, vector<8x1xf32>
      tpu.vector_store %arg18[%c0_56, %c0_57], %66 {strides = array<i32>} : memref<8x1xf32, #tpu.memory_space<vmem>>, vector<8x1xf32>,
      %cst_58 = arith.constant 0.000000e+00 : f32
      %68 = vector.broadcast %cst_58 : f32 to vector<8x8xf32>
      %c0_59 = arith.constant 0 : index
      %c0_60 = arith.constant 0 : index
      %69 = vector.load %arg19[%c0_59, %c0_60] : memref<8x8xf32, #tpu.memory_space<vmem>>, vector<8x8xf32>
      tpu.vector_store %arg19[%c0_59, %c0_60], %68 {strides = array<i32>} : memref<8x8xf32, #tpu.memory_space<vmem>>, vector<8x8xf32>,
    } else {
    }
    %c0 = arith.constant 0 : index
    %c0_1 = arith.constant 0 : index
    %c0_2 = arith.constant 0 : index
    %3 = vector.load %arg5[%c0, %c0_1, %c0_2] : memref<1x8x32xbf16, #tpu.memory_space<vmem>>, vector<1x8x32xbf16>
    %4 = vector.shape_cast %3 : vector<1x8x32xbf16> to vector<8x32xbf16>
    %c0_3 = arith.constant 0 : index
    %c0_4 = arith.constant 0 : index
    %c0_5 = arith.constant 0 : index
    %5 = vector.load %arg6[%c0_3, %c0_4, %c0_5] : memref<1x8x32xbf16, #tpu.memory_space<vmem>>, vector<1x8x32xbf16>
    %6 = vector.shape_cast %5 : vector<1x8x32xbf16> to vector<8x32xbf16>
    %c0_6 = arith.constant 0 : index
    %c0_7 = arith.constant 0 : index
    %c0_8 = arith.constant 0 : index
    %7 = vector.load %arg9[%c0_6, %c0_7, %c0_8] : memref<1x32x8xbf16, #tpu.memory_space<vmem>>, vector<1x32x8xbf16>
    %8 = vector.shape_cast %7 : vector<1x32x8xbf16> to vector<32x8xbf16>
    %cst = arith.constant dense<0.000000e+00> : vector<8x8xf32>
    %9 = tpu.matmul %4, %8, %cst {dimension_numbers = #tpu.dot_dimension_numbers<[1], [0], [0], [1], [0, 0, 1, 1], [], []>} : vector<8x32xbf16>, vector<32x8xbf16>, vector<8x8xf32> -> vector<8x8xf32>
    %c0_9 = arith.constant 0 : index
    %c0_10 = arith.constant 0 : index
    %c0_11 = arith.constant 0 : index
    %10 = vector.load %arg10[%c0_9, %c0_10, %c0_11] : memref<1x1x8xf32, #tpu.memory_space<vmem>>, vector<1x1x8xf32>
    %11 = vector.shape_cast %10 : vector<1x1x8xf32> to vector<1x8xf32>
    %12 = vector.broadcast %11 : vector<1x8xf32> to vector<8x8xf32>
    %13 = arith.addf %9, %12 : vector<8x8xf32>
    %c0_12 = arith.constant 0 : index
    %c0_13 = arith.constant 0 : index
    %c0_14 = arith.constant 0 : index
    %14 = vector.load %arg11[%c0_12, %c0_13, %c0_14] : memref<1x32x8xbf16, #tpu.memory_space<vmem>>, vector<1x32x8xbf16>
    %15 = vector.shape_cast %14 : vector<1x32x8xbf16> to vector<32x8xbf16>
    %cst_15 = arith.constant dense<0.000000e+00> : vector<8x8xf32>
    %16 = tpu.matmul %6, %15, %cst_15 {dimension_numbers = #tpu.dot_dimension_numbers<[1], [0], [0], [1], [0, 0, 1, 1], [], []>} : vector<8x32xbf16>, vector<32x8xbf16>, vector<8x8xf32> -> vector<8x8xf32>
    %c0_16 = arith.constant 0 : index
    %c0_17 = arith.constant 0 : index
    %c0_18 = arith.constant 0 : index
    %17 = vector.load %arg12[%c0_16, %c0_17, %c0_18] : memref<1x1x8xf32, #tpu.memory_space<vmem>>, vector<1x1x8xf32>
    %18 = vector.shape_cast %17 : vector<1x1x8xf32> to vector<1x8xf32>
    %19 = vector.broadcast %18 : vector<1x8xf32> to vector<8x8xf32>
    %20 = arith.addf %16, %19 : vector<8x8xf32>
    %21 = arith.truncf %13 : vector<8x8xf32> to vector<8x8xbf16>
    %22 = arith.truncf %20 : vector<8x8xf32> to vector<8x8xbf16>
    %c0_19 = arith.constant 0 : index
    %c0_20 = arith.constant 0 : index
    %23 = vector.load %arg16[%c0_19, %c0_20] : memref<8x8xbf16, #tpu.memory_space<vmem>>, vector<8x8xbf16>
    %cst_21 = arith.constant dense<0.000000e+00> : vector<8x8xf32>
    %24 = tpu.matmul %23, %21, %cst_21 {dimension_numbers = #tpu.dot_dimension_numbers<[1], [1], [0], [0], [0, 0, 1, 0], [], []>} : vector<8x8xbf16>, vector<8x8xbf16>, vector<8x8xf32> -> vector<8x8xf32>
    %c0_22 = arith.constant 0 : index
    %c0_23 = arith.constant 0 : index
    %25 = vector.load %arg17[%c0_22, %c0_23] : memref<8x1xf32, #tpu.memory_space<vmem>>, vector<8x1xf32>
    %cst_24 = arith.constant dense<0xFF800000> : vector<8xf32>
    %26 = vector.multi_reduction <maximumf>, %24, %cst_24 [1] : vector<8x8xf32> to vector<8xf32>
    %27 = vector.shape_cast %26 : vector<8xf32> to vector<8x1xf32>
    %28 = arith.maximumf %25, %27 : vector<8x1xf32>
    %29 = arith.subf %25, %28 : vector<8x1xf32>
    %30 = math.exp %29 : vector<8x1xf32>
    %31 = vector.broadcast %28 : vector<8x1xf32> to vector<8x8xf32>
    %32 = arith.subf %24, %31 : vector<8x8xf32>
    %33 = math.exp %32 : vector<8x8xf32>
    %c0_25 = arith.constant 0 : index
    %c0_26 = arith.constant 0 : index
    %34 = vector.load %arg18[%c0_25, %c0_26] : memref<8x1xf32, #tpu.memory_space<vmem>>, vector<8x1xf32>
    %35 = arith.mulf %30, %34 : vector<8x1xf32>
    %cst_27 = arith.constant dense<0.000000e+00> : vector<8xf32>
    %36 = vector.multi_reduction <add>, %33, %cst_27 [1] : vector<8x8xf32> to vector<8xf32>
    %37 = vector.shape_cast %36 : vector<8xf32> to vector<8x1xf32>
    %38 = arith.addf %35, %37 : vector<8x1xf32>
    %c0_28 = arith.constant 0 : index
    %c0_29 = arith.constant 0 : index
    %39 = vector.load %arg18[%c0_28, %c0_29] : memref<8x1xf32, #tpu.memory_space<vmem>>, vector<8x1xf32>
    tpu.vector_store %arg18[%c0_28, %c0_29], %38 {strides = array<i32>} : memref<8x1xf32, #tpu.memory_space<vmem>>, vector<8x1xf32>,
    %c0_30 = arith.constant 0 : index
    %c0_31 = arith.constant 0 : index
    %40 = vector.load %arg19[%c0_30, %c0_31] : memref<8x8xf32, #tpu.memory_space<vmem>>, vector<8x8xf32>
    %41 = vector.broadcast %30 : vector<8x1xf32> to vector<8x8xf32>
    %42 = arith.mulf %41, %40 : vector<8x8xf32>
    %43 = arith.truncf %33 : vector<8x8xf32> to vector<8x8xbf16>
    %cst_32 = arith.constant dense<0.000000e+00> : vector<8x8xf32>
    %44 = tpu.matmul %43, %22, %cst_32 {dimension_numbers = #tpu.dot_dimension_numbers<[1], [0], [0], [1], [0, 0, 1, 1], [], []>} : vector<8x8xbf16>, vector<8x8xbf16>, vector<8x8xf32> -> vector<8x8xf32>
    %45 = arith.addf %42, %44 : vector<8x8xf32>
    %c0_33 = arith.constant 0 : index
    %c0_34 = arith.constant 0 : index
    %46 = vector.load %arg19[%c0_33, %c0_34] : memref<8x8xf32, #tpu.memory_space<vmem>>, vector<8x8xf32>
    tpu.vector_store %arg19[%c0_33, %c0_34], %45 {strides = array<i32>} : memref<8x8xf32, #tpu.memory_space<vmem>>, vector<8x8xf32>,
    %c0_35 = arith.constant 0 : index
    %c0_36 = arith.constant 0 : index
    %47 = vector.load %arg17[%c0_35, %c0_36] : memref<8x1xf32, #tpu.memory_space<vmem>>, vector<8x1xf32>
    tpu.vector_store %arg17[%c0_35, %c0_36], %28 {strides = array<i32>} : memref<8x1xf32, #tpu.memory_space<vmem>>, vector<8x1xf32>,
    %c0_i32_37 = arith.constant 0 : i32
    %48 = arith.cmpi eq, %arg3, %c0_i32_37 : i32
    %49 = arith.extui %48 : i1 to i32
    %c0_i32_38 = arith.constant 0 : i32
    %50 = arith.cmpi ne, %49, %c0_i32_38 : i32
    scf.if %50 {
      %c0_39 = arith.constant 0 : index
      %c0_40 = arith.constant 0 : index
      %51 = vector.load %arg19[%c0_39, %c0_40] : memref<8x8xf32, #tpu.memory_space<vmem>>, vector<8x8xf32>
      %c0_41 = arith.constant 0 : index
      %c0_42 = arith.constant 0 : index
      %52 = vector.load %arg18[%c0_41, %c0_42] : memref<8x1xf32, #tpu.memory_space<vmem>>, vector<8x1xf32>
      %53 = tpu.reciprocal %52 {approx = true} : vector<8x1xf32> -> vector<8x1xf32>
      %54 = vector.broadcast %53 : vector<8x1xf32> to vector<8x8xf32>
      %55 = arith.mulf %51, %54 : vector<8x8xf32>
      %56 = arith.truncf %55 : vector<8x8xf32> to vector<8x8xbf16>
      %c0_43 = arith.constant 0 : index
      %c0_44 = arith.constant 0 : index
      %c0_45 = arith.constant 0 : index
      %57 = vector.load %arg13[%c0_43, %c0_44, %c0_45] : memref<1x8x32xbf16, #tpu.memory_space<vmem>>, vector<1x8x32xbf16>
      %58 = vector.shape_cast %57 : vector<1x8x32xbf16> to vector<8x32xbf16>
      %cst_46 = arith.constant dense<0.000000e+00> : vector<8x32xf32>
      %59 = tpu.matmul %56, %58, %cst_46 {dimension_numbers = #tpu.dot_dimension_numbers<[1], [0], [0], [1], [0, 0, 1, 1], [], []>} : vector<8x8xbf16>, vector<8x32xbf16>, vector<8x32xf32> -> vector<8x32xf32>
      %c0_i32_47 = arith.constant 0 : i32
      %60 = arith.cmpi eq, %arg2, %c0_i32_47 : i32
      %61 = arith.extui %60 : i1 to i32
      %c0_i32_48 = arith.constant 0 : i32
      %62 = arith.cmpi ne, %61, %c0_i32_48 : i32
      scf.if %62 {
        %c0_52 = arith.constant 0 : index
        %c0_53 = arith.constant 0 : index
        %69 = vector.load %arg14[%c0_52, %c0_53] : memref<1x32xf32, #tpu.memory_space<vmem>>, vector<1x32xf32>
        %70 = vector.broadcast %69 : vector<1x32xf32> to vector<8x32xf32>
        %71 = arith.addf %59, %70 : vector<8x32xf32>
        %c0_54 = arith.constant 0 : index
        %c0_55 = arith.constant 0 : index
        %72 = vector.load %arg20[%c0_54, %c0_55] : memref<8x32xf32, #tpu.memory_space<vmem>>, vector<8x32xf32>
        tpu.vector_store %arg20[%c0_54, %c0_55], %71 {strides = array<i32>} : memref<8x32xf32, #tpu.memory_space<vmem>>, vector<8x32xf32>,
      } else {
      }
      %c0_i32_49 = arith.constant 0 : i32
      %63 = arith.cmpi sgt, %arg2, %c0_i32_49 : i32
      %64 = arith.extui %63 : i1 to i32
      %c0_i32_50 = arith.constant 0 : i32
      %65 = arith.cmpi ne, %64, %c0_i32_50 : i32
      scf.if %65 {
        %c0_52 = arith.constant 0 : index
        %c0_53 = arith.constant 0 : index
        %69 = vector.load %arg20[%c0_52, %c0_53] : memref<8x32xf32, #tpu.memory_space<vmem>>, vector<8x32xf32>
        %70 = arith.addf %69, %59 : vector<8x32xf32>
        %c0_54 = arith.constant 0 : index
        %c0_55 = arith.constant 0 : index
        %71 = vector.load %arg20[%c0_54, %c0_55] : memref<8x32xf32, #tpu.memory_space<vmem>>, vector<8x32xf32>
        tpu.vector_store %arg20[%c0_54, %c0_55], %70 {strides = array<i32>} : memref<8x32xf32, #tpu.memory_space<vmem>>, vector<8x32xf32>,
      } else {
      }
      %c3_i32 = arith.constant 3 : i32
      %66 = arith.cmpi eq, %arg2, %c3_i32 : i32
      %67 = arith.extui %66 : i1 to i32
      %c0_i32_51 = arith.constant 0 : i32
      %68 = arith.cmpi ne, %67, %c0_i32_51 : i32
      scf.if %68 {
        %c0_52 = arith.constant 0 : index
        %c0_53 = arith.constant 0 : index
        %69 = vector.load %arg20[%c0_52, %c0_53] : memref<8x32xf32, #tpu.memory_space<vmem>>, vector<8x32xf32>
        %c0_54 = arith.constant 0 : index
        %c0_55 = arith.constant 0 : index
        %c0_56 = arith.constant 0 : index
        %70 = vector.load %arg15[%c0_54, %c0_55, %c0_56] : memref<1x8x32xf32, #tpu.memory_space<vmem>>, vector<1x8x32xf32>
        %71 = vector.shape_cast %70 : vector<1x8x32xf32> to vector<8x32xf32>
        %72 = vector.shape_cast %69 : vector<8x32xf32> to vector<1x8x32xf32>
        tpu.vector_store %arg15[%c0_54, %c0_55, %c0_56], %72 {strides = array<i32>} : memref<1x8x32xf32, #tpu.memory_space<vmem>>, vector<1x8x32xf32>,
      } else {
      }
    } else {
    }
    return
  }
  func.func @transform_0(%arg0: i32, %arg1: i32, %arg2: i32, %arg3: i32) -> (i32, i32, i32) {
    %c0_i32 = arith.constant 0 : i32
    %c0_i32_0 = arith.constant 0 : i32
    return %arg0, %arg1, %c0_i32 : i32, i32, i32
  }
  func.func @transform_1(%arg0: i32, %arg1: i32, %arg2: i32, %arg3: i32) -> (i32, i32, i32) {
    %c0_i32 = arith.constant 0 : i32
    %c0_i32_0 = arith.constant 0 : i32
    return %arg0, %arg3, %c0_i32 : i32, i32, i32
  }
  func.func @transform_2(%arg0: i32, %arg1: i32, %arg2: i32, %arg3: i32) -> (i32, i32, i32) {
    %c0_i32 = arith.constant 0 : i32
    %c0_i32_0 = arith.constant 0 : i32
    return %arg0, %arg3, %c0_i32 : i32, i32, i32
  }
  func.func @transform_3(%arg0: i32, %arg1: i32, %arg2: i32, %arg3: i32) -> (i32, i32, i32) {
    %c0_i32 = arith.constant 0 : i32
    %c0_i32_0 = arith.constant 0 : i32
    %c0_i32_1 = arith.constant 0 : i32
    return %arg2, %c0_i32, %c0_i32_0 : i32, i32, i32
  }
  func.func @transform_4(%arg0: i32, %arg1: i32, %arg2: i32, %arg3: i32) -> (i32, i32, i32) {
    %c0_i32 = arith.constant 0 : i32
    %c0_i32_0 = arith.constant 0 : i32
    %c0_i32_1 = arith.constant 0 : i32
    return %arg2, %c0_i32, %c0_i32_0 : i32, i32, i32
  }
  func.func @transform_5(%arg0: i32, %arg1: i32, %arg2: i32, %arg3: i32) -> (i32, i32, i32) {
    %c0_i32 = arith.constant 0 : i32
    %c0_i32_0 = arith.constant 0 : i32
    %c0_i32_1 = arith.constant 0 : i32
    return %arg2, %c0_i32, %c0_i32_0 : i32, i32, i32
  }
  func.func @transform_6(%arg0: i32, %arg1: i32, %arg2: i32, %arg3: i32) -> (i32, i32, i32) {
    %c0_i32 = arith.constant 0 : i32
    %c0_i32_0 = arith.constant 0 : i32
    %c0_i32_1 = arith.constant 0 : i32
    return %arg2, %c0_i32, %c0_i32_0 : i32, i32, i32
  }
  func.func @transform_7(%arg0: i32, %arg1: i32, %arg2: i32, %arg3: i32) -> (i32, i32, i32) {
    %c0_i32 = arith.constant 0 : i32
    %c0_i32_0 = arith.constant 0 : i32
    %c0_i32_1 = arith.constant 0 : i32
    return %arg2, %c0_i32, %c0_i32_0 : i32, i32, i32
  }
  func.func @transform_8(%arg0: i32, %arg1: i32, %arg2: i32, %arg3: i32) -> (i32, i32, i32) {
    %c0_i32 = arith.constant 0 : i32
    %c0_i32_0 = arith.constant 0 : i32
    %c0_i32_1 = arith.constant 0 : i32
    return %arg2, %c0_i32, %c0_i32_0 : i32, i32, i32
  }
  func.func @transform_9(%arg0: i32, %arg1: i32, %arg2: i32, %arg3: i32) -> (i32, i32, i32) {
    %c0_i32 = arith.constant 0 : i32
    %c0_i32_0 = arith.constant 0 : i32
    %c0_i32_1 = arith.constant 0 : i32
    return %arg2, %c0_i32, %c0_i32_0 : i32, i32, i32
  }
  func.func @transform_10(%arg0: i32, %arg1: i32, %arg2: i32, %arg3: i32) -> (i32, i32) {
    %c0_i32 = arith.constant 0 : i32
    %c0_i32_0 = arith.constant 0 : i32
    %c0_i32_1 = arith.constant 0 : i32
    return %c0_i32, %c0_i32_0 : i32, i32
  }
  func.func @transform_11(%arg0: i32, %arg1: i32, %arg2: i32, %arg3: i32) -> (i32, i32, i32) {
    %c0_i32 = arith.constant 0 : i32
    %c0_i32_0 = arith.constant 0 : i32
    return %arg0, %arg1, %c0_i32 : i32, i32, i32
  }
}

</mosaic_0001>

<bundles_post_ra>
// kernel: tpu_custom_call.1
= control target key start
LH: loop header
LB: loop body
LE: loop exit
PB: predicated region body
PF: predicated region fallthrough
CT: control target
= control target key end

     0   :  { %16 = vsyncpa [#allocation8], 0  ;;  %s1807_s0 = inlined_call_operand.vmem [shape: bf16[2,8,32], index: 0, kind: input, shape index: {}]   ;;  %s1808_s1 = inlined_call_operand.vmem [shape: bf16[2,8,32], index: 1, kind: input, shape index: {}]   ;;  %s1809_s2 = inlined_call_operand.vmem [shape: bf16[2,8,32], index: 2, kind: input, shape index: {}]   ;;  %s1810_s3 = inlined_call_operand.vmem [shape: bf16[4,32,8], index: 3, kind: input, shape index: {}]   ;;  %s1811_s4 = inlined_call_operand.vmem [shape: f32[4,1,8], index: 4, kind: input, shape index: {}]   ;;  %s1812_s5 = inlined_call_operand.vmem [shape: bf16[4,32,8], index: 5, kind: input, shape index: {}]   ;;  %s1813_s6 = inlined_call_operand.vmem [shape: f32[4,1,8], index: 6, kind: input, shape index: {}]   ;;  %s1814_s7 = inlined_call_operand.vmem [shape: bf16[4,32,8], index: 7, kind: input, shape index: {}]   ;;  %s1815_s8 = inlined_call_operand.vmem [shape: f32[4,1,8], index: 8, kind: input, shape index: {}]   ;;  %s1816_s9 = inlined_call_operand.vmem [shape: bf16[4,8,32], index: 9, kind: input, shape index: {}]   ;;  %s1817_s10 = inlined_call_operand.vmem [shape: f32[1,32], index: 10, kind: input, shape index: {}]   ;;  %s1818_s11 = inlined_call_operand.hbm [shape: f32[2,8,32], index: 11, kind: output, shape index: {}]  }
   0x1   :  { %18 = vsyncpa [#allocation8 + $0x1], 0  ;;  %s1580_s17 = smov 0   ;;  %s1582_s18 = smov 0  }
   0x2   :  { %s1584_s19 = smov 0   ;;  %s1586_s20 = smov 0  }
   0x3   :  { %s1588_s21 = smov 0   ;;  %s1590_s22 = smov 0  }
   0x4   :  { %s1592_s23 = smov 0   ;;  %s1594_s24 = smov 0  }
   0x5 LB: > { %1826 = sst [smem:[#allocation10_spill]] %s1485_s17  ;;  %s1231_s25 = sadd.s32 4294967295, %s1513_s24   ;;  %s1513_s24 = sphi %s1594_s24, %s24_s24   ;;  %s1509_s23 = sphi %s1592_s23, %s1844_s23   ;;  %s1505_s22 = sphi %s1590_s22, %s1843_s22   ;;  %s1501_s21 = sphi %s1588_s21, %s1842_s21   ;;  %s1497_s20 = sphi %s1586_s20, %s1847_s20   ;;  %s1493_s19 = sphi %s1584_s19, %s1840_s19   ;;  %s1489_s18 = sphi %s1582_s18, %s1846_s18   ;;  %s1485_s17 = sphi %s1580_s17, %s1845_s17  }
   0x6   : > { %1827 = sst [smem:[#allocation11_spill]] %s1493_s19  ;;  %s1232_s26 = sadd.s32 4294967294, %s1513_s24  }
   0x7   : > { %1828 = sst [smem:[#allocation12_spill]] %s1505_s22  ;;  %s42_s27 = sadd.s32 1, %s1505_s22 }
   0x8   : > { %1829 = sst [smem:[#allocation13_spill]] %s1509_s23  ;;  %p44_p0 = scmp.ge.s32.totalorder %s42_s27, 4 }
   0x9   : > { %s50_s28 = sadd.s32 1, %s1509_s23  ;;  %p356_p1 = scmp.ne.s32.totalorder %s1493_s19, %s1489_s18 }
   0xa   : > { %p357_p2 = scmp.eq.s32.totalorder %s1231_s25, 7  ;;  %s1849_s27 = smov (%p44_p0, %s42_s27), 0 }
   0xb   : > { %1830 = sst [smem:[#allocation14_spill]] %s1849_s27  ;;  %s1851_s28 = smov (!%p44_p0, %s50_s28), %s1509_s23 }
   0xc   : > { %p1629_p3 = por %p357_p2, %p356_p1  ;;  %p362_p4 = scmp.ne.s32.totalorder %s1489_s18, %s1485_s17 }
   0xd   : > { %p52_p5 = scmp.ge.s32.totalorder %s1851_s28, 2  ;;  %p363_p6 = scmp.eq.s32.totalorder %s1232_s26, 7 }
   0xe   : > { %p1235_p7 = scmp.ge.s32.totalorder %s1513_s24, 1  ;;  %p463_p8 = scmp.lt.s32.totalorder %s1513_s24, 9 }
   0xf   : > { %s1853_s28 = smov (%p52_p5, %s1851_s28), 0  ;;  %p1639_p9 = por %p363_p6, %p362_p4 }
  0x10   : > { %1832 = sst [smem:[#allocation15_spill]] %s1853_s28  ;;  %p464_p10 = pnand %p1235_p7, %p463_p8 }
  0x11   : > { %s1833_s30 = scalar_select %p1639_p9, 1, 0 }
  0x12   : > { %s341_s12 = ssub.s32 %s1509_s23, %s1853_s28  ;;  %s346_s13 = sadd.s32 1, %s1493_s19  ;;  %v1515_v0 = vmov (!%p464_p10), 0.0   ;;  %vm1516_vm0 = vmmov (!%p464_p10), 0   ;;  %vm625_vm1 = vcmask (!%p464_p10), 261120   ;;  %vm676_vm2 = vcmask (!%p464_p10), 64512  }
  0x13   : > { %1834 = sst [smem:[#allocation16_spill]] %s1833_s30  ;;  %p344_p11 = scmp.eq.s32.totalorder %s341_s12, 0  ;;  %1288 = vmatprep.subr.bf16.mxu0 (!%p464_p10), %v1515_v0  ;;  %1296 = vmatprep.subr.bf16.mxu1 (!%p464_p10), %v1515_v0  ;;  %677 = vst.msk [vmem:[#allocation5] sm:$0xff] (!%p464_p10), %vm676_vm2, %v1515_v0  ;;  %vm671_vm3 = vcmask (!%p464_p10), 60416   ;;  %vm673_vm4 = vcmask (!%p464_p10), 7168   ;;  %v1517_v25 = vmov (!%p464_p10), -inf  }
  0x14   : > { %467 = sbr.rel (%p464_p10) target bundleno = 1320 (0x528), region = 64  ;;  %s1819_s15 = sand.u32 (!%p464_p10), 1, %s1489_s18   ;;  %1292 = vmatprep.mubr.msk.bf16.mxu0 (!%p464_p10), %vm1516_vm0, %v1515_v0  ;;  %1300 = vmatprep.mubr.msk.bf16.mxu1 (!%p464_p10), %vm1516_vm0, %v1515_v0  ;;  %674 = vst.msk [vmem:[#allocation3] sm:$0xff] (!%p464_p10), %vm673_vm4, %v1517_v25  ;;  %675 = vst.msk [vmem:[#allocation4] sm:$0xff] (!%p464_p10), %vm673_vm4, %v1515_v0  ;;  %v1518_v33 = vmov (!%p464_p10), 0   ;;  %vm898_vm5 = vcmask (!%p464_p10), 1043456  }
  0x15   : > { %s1647_s14 = scalar_select %p344_p11, %s1493_s19, %s346_s13  }
  0x16   : > { %p568_p12 = scmp.lt.s32.totalorder (!%p464_p10), %s1497_s20, 3  ;;  %s1653_s16 = sshll.u32 (!%p464_p10), %s1819_s15, 3  ;;  %1405 = vset.pattern.permute.xlu0 (!%p464_p10), %v1518_v33  ;;  %1406 = vset.pattern.permute.xlu1 (!%p464_p10), %v1518_v33 }
  0x17   : > { %1835 = sst [smem:[#allocation17_spill]] %s1647_s14  ;;  %p547_p13 = scmp.lt.s32.totalorder (!%p464_p10), %s1501_s21, 1 }
  0x18   : > { %p1262_p0 = scmp.ne.s32.totalorder (!%p464_p10), %s1497_s20, 0 }
  0x1a   : > { %v887_v62 = vld [vmem:[#allocation5] sm:$0xff] (!%p464_p10) }
  0x1b   : > { %s1663_s25 = scalar_select %p568_p12, %s1497_s20, 3  ;;  %v863_v34 = vld [vmem:[#allocation3] sm:$0xff]  ;;  %v879_v56 = vld [vmem:[#allocation4] sm:$0xff] }
  0x1c   : > { %s548_s26 = scalar_select %p547_p13, %s1501_s21, 1 }
  0x1d   : > { %s1270_s12 = sshll.u32 %s1663_s25, 4  ;;  %s575_s30 = scalar_lea.vmem %s1811_s4, %s1663_s25 }
  0x1e   : > { %s572_s28 = scalar_lea.vmem %s1810_s3, %s1270_s12  ;;  %s580_s22 = scalar_lea.vmem %s1812_s5, %s1270_s12  ;;  %v1247_v7 = vld [vmem:[%s575_s30] ss:$0 sm:$0xff] }
  0x1f   : > { %v1407_v1 = vld [vmem:[%s572_s28] sm:$0xff]   ;;  %s1673_s14 = sshll.u32 %s548_s26, 2  ;;  %v1409_v3 = vld [vmem:[%s572_s28 + $0x8] sm:$0xff]   ;;  %s1678_s17 = scalar_lea.vmem %s1814_s7, %s1270_s12 }
  0x20   : > { %v1408_v2 = vld [vmem:[%s580_s22] sm:$0xff]   ;;  %1289 = vmatpush3.bf16.msra.mxu0 %v1407_v1  ;;  %v1410_v4 = vld [vmem:[%s580_s22 + $0x8] sm:$0xff]   ;;  %s553_s23 = scalar_lea.vmem %s1807_s0, %s1673_s14  ;;  %s560_s28 = scalar_lea.vmem %s1808_s1, %s1673_s14 }
  0x21   : > { %1297 = vmatpush3.bf16.msra.mxu1 %v1408_v2  ;;  %1290 = vmatprep.subr.bf16.mxu0 %v1515_v0  ;;  %v601_v5 = vld [vmem:[%s553_s23] sm:$0xf]  ;;  %s583_s13 = scalar_lea.vmem %s1813_s6, %s1663_s25  ;;  %v1412_v26 = vld [vmem:[%s1678_s17 + $0x8] sm:$0xff]   ;;  %s567_s26 = scalar_lea.vmem %s1809_s2, %s1673_s14 }
  0x22   : > { %1298 = vmatprep.subr.bf16.mxu1 %v1515_v0  ;;  %v678_v6 = vld [vmem:[%s560_s28] sm:$0xf]  ;;  %s591_s28 = scalar_lea.vmem %s1815_s8, %s1663_s25  ;;  %s1246_s19 = sshll.u32 %s1663_s25, 2 }
  0x23   : > { %v1251_v8 = vld [vmem:[%s583_s13] ss:$0 sm:$0xff]  ;;  %s595_s12 = scalar_lea.vmem %s1816_s9, %s1246_s19  ;;  %s546_s25 = scalar_lea.vmem [#allocation7], %s1653_s16 }
  0x24   : > { %1291 = vmatpush3.bf16.msra.mxu0 %v1409_v3  ;;  %v1411_v24 = vld [vmem:[%s1678_s17] sm:$0xff]  }
  0x25   : > { %1299 = vmatpush3.bf16.msra.mxu1 %v1410_v4  ;;  %1304 = vmatprep.subr.bf16.mxu0 %v1515_v0  ;;  %v679_v27 = vld [vmem:[%s567_s26] sm:$0xf] }
  0x26   : > { %1312 = vmatprep.subr.bf16.mxu1 %v1515_v0  ;;  %v1255_v39 = vld [vmem:[%s591_s28] ss:$0 sm:$0xff] }
  0x27   : > { %1293 = vmatmul.mubr.msk.bf16.vlgmr.msra.gmra.mrb[0].mxu0 %vm625_vm1, %v601_v5  ;;  %v958_v54 = vld [vmem:[%s595_s12] sm:$0xf] }
  0x28   : > { %1301 = vmatmul.mubr.msk.bf16.vlgmr.msra.gmra.mrb[0].mxu1 %vm625_vm1, %v678_v6  ;;  %1308 = vmatprep.mubr.msk.bf16.mxu0 %vm1516_vm0, %v1515_v0  ;;  %v963_v55 = vsel %vm898_vm5, %v958_v54, 0 }
  0x29   : > { %1314 = vmatprep.mubr.msk.bf16.mxu1 %vm1516_vm0, %v1515_v0  ;;  %1305 = vmatpush3.bf16.msra.mxu0 %v1411_v24 }
  0x2a   : > { %1306 = vmatprep.subr.bf16.mxu0 %v1515_v0 }
  0x2d   : > { %1307 = vmatpush3.bf16.msra.mxu0 %v1412_v26 }
  0x2e   : > { %1318 = vmatprep.subr.bf16.mxu0 %v1515_v0 }
  0x30   : > { %1309 = vmatmul.mubr.msk.bf16.vlgmr.msra.gmra.mrb[4].mxu0 %vm625_vm1, %v679_v27 }
  0x31   : > { %1320 = vmatprep.mubr.msk.bf16.mxu0 %vm1516_vm0, %v1515_v0 }
  0xfa   : > { %v663_v9 = vpop.f32.mrb[0].mxu0 }
  0xfb   : > { %v664_v10 = vadd.f32 %v1247_v7, %v663_v9  ;;  %v741_v11 = vpop.f32.mrb[0].mxu1  ;;  %v1294_v12 = vpop.f32.mrb[1].mxu0 }
  0xfc   : > { %v742_v13 = vadd.f32 %v1251_v8, %v741_v11  ;;  %v1302_v14 = vpop.f32.mrb[1].mxu1  ;;  %v666_v15 = vpop.f32.mrb[2].mxu0 }
  0xfd   : > { %v669_v16 = vmul.f32 0.35355338, %v664_v10  ;;  %v744_v17 = vpop.f32.mrb[2].mxu1  ;;  %v1295_v18 = vpop.f32.mrb[3].mxu0  ;;  %v1263_v14 = vld [vmem:[%s1817_s10] ss:$0 sm:$0xff] (!%p1262_p0) }
  0xfe   : > { %v813_v19 = vpack.c.bf16 %v742_v13, %v742_v13  ;;  %v1303_v20 = vpop.f32.mrb[3].mxu1 }
  0xff   : > { %v670_v21 = vpack.c.bf16 %v669_v16, %v669_v16 }
 0x100   : > { %v821_v22 = vsel %vm676_vm2, %v813_v19, 0 }
 0x101   : > { %672 = vst.msk [vmem:[#allocation2] sm:$0xf] %vm671_vm3, %v670_v21  ;;  %1313 = vmatpush3.bf16.xpose.msra.mxu1 %v821_v22 }
 0x102   : > { %1324 = vmatprep.subr.bf16.mxu1 %v1515_v0 }
 0x103   : > { %v807_v38 = vpop.f32.mrb[4].mxu0 }
 0x104   : > { %v1310_v40 = vpop.f32.mrb[5].mxu0  ;;  %v808_v41 = vadd.f32 %v1255_v39, %v807_v38 }
 0x105   : > { %v810_v42 = vpop.f32.mrb[6].mxu0 }
 0x106   : > { %v1311_v43 = vpop.f32.mrb[7].mxu0  ;;  %v814_v44 = vpack.c.bf16 %v808_v41, %v808_v41 }
 0x108   : > { %v815_v23 = vld [vmem:[#allocation2] sm:$0xf]  ;;  %v900_v45 = vsel %vm898_vm5, %v814_v44, 0 }
 0x109   : > { %1315 = vmatmul.mubr.msk.bf16.vlgmr.msra.gmra.mrb[4].mxu1 %vm676_vm2, %v815_v23  ;;  %1319 = vmatpush3.bf16.msra.mxu0 %v900_v45 }
 0x10a   : > { %1326 = vmatprep.mubr.msk.bf16.mxu1 %vm1516_vm0, %v1515_v0  ;;  %1325 = vmatpush3.bf16.msra.mxu1 %v963_v55 }
 0x1dc   : > { %v857_v28 = vpop.f32.mrb[4].mxu1 }
 0x1dd   : > { %v1316_v29 = vpop.f32.mrb[5].mxu1  ;;  %v864_v30 = vsel %vm676_vm2, %v857_v28, -inf }
 0x1de   : > { %865 = vmax.xlane.f32.xlu0 %v864_v30  ;;  %v860_v31 = vpop.f32.mrb[6].mxu1 }
 0x1df   : > { %v1317_v32 = vpop.f32.mrb[7].mxu1 }
 0x26b   : > { %v866_v35 = vpop.xlane.xlu0 %865 }
 0x26c   : > { %v867_v36 = vmax.f32 %v863_v34, %v866_v35 }
 0x26e   : > { %v868_v37 = vsub.f32 %v863_v34, %v867_v36  ;;  %944 = vst.msk [vmem:[#allocation3] sm:$0xff] %vm673_vm4, %v867_v36  ;;  %873 = vperm.xlu0 %1405, %v867_v36  }
 0x270   : > { %v869_v52 = vmul.f32 1.442695, %v868_v37 }
 0x2ed   : > { %v874_v46 = vpop.permute.xlu0 %873 }
 0x2ee   : > { %v876_v47 = vsub.f32 %v857_v28, %v874_v46 }
 0x2f0   : > { %v877_v48 = vmul.f32 1.442695, %v876_v47 }
 0x2f2   : > { %1413 = vpow2.f32 %v877_v48 }
 0x2f3   : > { %1415 = vpow2.f32 %v869_v52 }
 0x2fc   : > { %v1414_v49 = vpop.eup %1413 }
 0x2fd   : > { %v881_v50 = vsel %vm676_vm2, %v1414_v49, 0.0  ;;  %v894_v51 = vpack.c.bf16 %v1414_v49, %v1414_v49  ;;  %v1416_v53 = vpop.eup %1415 }
 0x2fe   : > { %882 = vadd.xlane.f32.xlu1 %v881_v50  ;;  %v880_v57 = vmul.f32 %v1416_v53, %v879_v56 }
 0x2ff   : > { %1321 = vmatmul.mubr.msk.bf16.vlgmr.msra.gmra.mrb[8].mxu0 %vm676_vm2, %v894_v51 }
 0x30f   : > { %890 = vperm.xlu1 %1406, %v1416_v53  }
 0x38b   : > { %v883_v58 = vpop.xlane.xlu1 %882 }
 0x38c   : > { %v884_v59 = vadd.f32 %v883_v58, %v880_v57 }
 0x38e   : > { %886 = vst.msk [vmem:[#allocation4] sm:$0xff] %vm673_vm4, %v884_v59 }
 0x38f   : > { %v891_v63 = vpop.permute.xlu1 %890 }
 0x390   : > { %v893_v0 = vmul.f32 %v891_v63, %v887_v62 }
 0x395   : > { %v949_v60 = vld [vmem:[#allocation4] sm:$0xff] }
 0x396   : > { %1417 = vrcp.f32 %v949_v60 }
 0x3a0   : > { %v1418_v61 = vpop.eup %1417 }
 0x3a1   : > { %953 = vperm.xlu1 %1406, %v1418_v61  }
 0x3d2   : > { %v936_v1 = vpop.f32.mrb[8].mxu0 }
 0x3d3   : > { %v942_v2 = vadd.f32 %v936_v1, %v893_v0  ;;  %v1322_v3 = vpop.f32.mrb[9].mxu0 }
 0x3d4   : > { %v939_v4 = vpop.f32.mrb[10].mxu0 }
 0x3d5   : > { %943 = vst.msk [vmem:[#allocation5] sm:$0xff] %vm676_vm2, %v942_v2  ;;  %v1323_v5 = vpop.f32.mrb[11].mxu0 }
 0x3dc   : > { %v948_v7 = vld [vmem:[#allocation5] sm:$0xff] }
 0x420   : > { %v954_v6 = vpop.permute.xlu1 %953 }
 0x421   : > { %v956_v8 = vmul.f32 %v954_v6, %v948_v7 }
 0x423   : > { %v957_v9 = vpack.c.bf16 %v956_v8, %v956_v8 }
 0x425   : > { %1327 = vmatmul.mubr.msk.bf16.vlgmr.msra.gmra.mrb[8].mxu1 %vm676_vm2, %v957_v9 }
 0x4f5   : > { %1008 = sbr.rel (%p1262_p0) target bundleno = 1276 (0x4fc), region = 76 }
 0x4f8   : > { %v999_v10 = vpop.f32.mrb[8].mxu1 }
 0x4f9   : > { %v1328_v11 = vpop.f32.mrb[9].mxu1  ;;  %v1016_v15 = vadd.f32 (!%p1262_p0), %v1263_v14, %v999_v10 }
 0x4fa   : > { %v1002_v12 = vpop.f32.mrb[10].mxu1 }
 0x4fb   : > { %v1329_v13 = vpop.f32.mrb[11].mxu1  ;;  %1017 = vst.msk [vmem:[#allocation6] sm:$0xff] (!%p1262_p0), %vm625_vm1, %v1016_v15 }
 0x4fc PF: > { %p1264_p1 = scmp.le.s32.totalorder %s1497_s20, 0 }
 0x4fe   : > { %1021 = sbr.rel (%p1264_p1) target bundleno = 1286 (0x506), region = 80 }
 0x502   : > { %v1022_v16 = vld [vmem:[#allocation6] sm:$0xff] (!%p1264_p1) }
 0x503   : > { %v1023_v17 = vadd.f32 (!%p1264_p1), %v1022_v16, %v999_v10 }
 0x505   : > { %1024 = vst.msk [vmem:[#allocation6] sm:$0xff] %vm625_vm1, %v1023_v17 }
 0x506 PF: > { %p1265_p2 = scmp.ne.s32.totalorder %s1497_s20, 3 }
 0x508   : > { %1028 = sbr.rel (%p1265_p2) target bundleno = 1295 (0x50f), region = 84 }
 0x50c   : > { %v1029_v18 = vld [vmem:[#allocation6] sm:$0xff] (!%p1265_p2) }
 0x50d   : > { %1030 = vst.msk [vmem:[%s546_s25] sm:$0xff] (!%p1265_p2), %vm625_vm1, %v1029_v18 }
 0x50f PF: > { %s1267_s16 = sshll.u32 %s1501_s21, 7  ;;  %s1046_s17 = sshll.u32 %s546_s25, 4  ;;  %s1047_s17 = int_to_ptr.vmem [resolvable:$true] %s1046_s17 }
 0x510   : > { %s1758_s26 = scalar_lea.hbm %s1818_s11, %s1267_s16  ;;  %s1836_s14 = sand.u32 1, %s1489_s18  }
 0x511   : > { %s1032_s28 = scalar_lea.sflag [#allocation8], %s1836_s14  ;;  %s1419_s19 = scalar_lea.vmem %s1047_s17, 128 }
 0x512   : > { %p1420_p4 = scmp.ne.s32.totalorder %s1047_s17, %s1419_s19  ;;  %s1519_s20 = smov [#allocation7]  }
 0x513   : > { %s1423_s22 = sshll.u32 %s1519_s20, 4  ;;  %s1424_s22 = int_to_ptr.vmem [resolvable:$false] %s1423_s22 }
 0x514   : > { %p1421_p5 = pnand %p1420_p4, %p1629_p3  ;;  %s1425_s30 = scalar_lea.vmem %s1424_s22, 256 }
 0x515   : > { %p1426_p7 = scmp.lt.s32.totalorder %s1047_s17, %s1424_s22  ;;  %p1427_p8 = scmp.lt.s32.totalorder %s1425_s30, %s1419_s19 }
 0x516   : > { %p1422_p6 = pneg %p1421_p5 }
 0x517   : > { %p1428_p10 = por %p1427_p8, %p1426_p7 }
 0x519   : > { %p1429_p11 = pnand %p1428_p10, %p1422_p6 }
 0x51b   : > { %1432 = shalt.err (!%p1429_p11)
}
 0x51c   : > { %s1433_s21 = scalar_lea.hbm %s1758_s26, 128  ;;  %s1437_s15 = scalar_lea.hbm %s1818_s11, 256 }
 0x51d   : > { %p1434_p12 = scmp.ne.s32.totalorder %s1758_s26, %s1433_s21  ;;  %p1438_p1 = scmp.lt.u32.totalorder %s1758_s26, %s1818_s11 }
 0x51e   : > { %p1439_p2 = scmp.lt.u32.totalorder %s1437_s15, %s1433_s21  ;;  %p1441_p5 = scmp.lt.u32.totalorder %s1433_s21, %s1758_s26 }
 0x51f   : > { %p1435_p13 = pnand %p1434_p12, %p1629_p3 }
 0x520   : > { %p1440_p4 = por %p1439_p2, %p1438_p1 }
 0x521   : > { %p1436_p0 = pneg %p1435_p13 }
 0x522   : > { %p1442_p6 = por %p1441_p5, %p1440_p4 }
 0x524   : > { %p1443_p7 = pnand %p1442_p6, %p1436_p0 }
 0x526   : > { %1446 = shalt.err (!%p1443_p7)
}
 0x527   : > { %1330 = dma.vmem_to_hbm [thread:$0]  (%p1629_p3), %s1047_s17, 128, %s1758_s26, %s1032_s28  }
 0x528 PF: > { %s1837_s23 = sld [smem:[#allocation10_spill]]  ;;  %p1336_p8 = scmp.ge.s32.totalorder %s1513_s24, 2 }
 0x52a   : > { %p1333_p10 = pnand %p1336_p8, %p1639_p9 }
 0x52e   : > { %s1058_s14 = sand.u32 1, %s1837_s23  }
 0x52f   : > { %s1059_s19 = scalar_lea.sflag [#allocation8], %s1058_s14 }
 0x530   : > { %1480 = dma.done.wait (!%p1333_p10), %s1059_s19, 128  }
 0x531   : > { %1482 = vsyncadd (!%p1333_p10), %s1059_s19, 4294967168  ;;  %s24_s24 = sadd.s32 1, %s1513_s24   ;;  %s1839_s20 = sld [smem:[#allocation11_spill]] }
 0x532   : > { %p21_p11 = scmp.ge.s32.totalorder %s24_s24, 10   ;;  %s1840_s19 = sld [smem:[#allocation17_spill]] }
 0x533   : > { %s1841_s29 = sld [smem:[#allocation12_spill]]  ;;  %s1842_s21 = sld [smem:[#allocation13_spill]] }
 0x534   : > { %s1843_s22 = sld [smem:[#allocation14_spill]]  ;;  %s1844_s23 = sld [smem:[#allocation15_spill]] }
 0x535   : > { %s1845_s17 = smov %s1489_s18  ;;  %23 = sbr.rel (!%p21_p11) target bundleno = 5 (0x5), region = 146 }
 0x537   : > { %s1846_s18 = smov %s1839_s20 }
 0x539   : > { %s1847_s20 = smov %s1841_s29 }
 0x53c   :  { %1064 = vsyncpa [#allocation8], 1 }
 0x53d   :  { %1066 = vsyncpa [#allocation8 + $0x1], 1 }

</bundles_post_ra>
